<compile_context>
chip_gen: v5e
topology: v5e:2x2
jax: 0.10.0
libtpu: 0.0.40
codegen_flags: <defaults>
</compile_context>

<pallas_src>
import jax
import jax.numpy as jnp
from jax.experimental import pallas as pl
from jax.experimental.pallas import tpu as pltpu

WIDTH = 128  # lane-dense feature width (all layer dims here are <= 128)


# ----------------------------------------------------------------------------
# Kernel: fused, weight-resident MLP over one batch tile.
# ----------------------------------------------------------------------------
def make_critic_kernel(n_hidden):
    def kernel(x_ref, w_ref, v_ref, out_ref):
        h = x_ref[...]                                    # (TB, 128) f32, lane-dense
        for i in range(n_hidden):                         # static unroll
            w = w_ref[i]                                  # (128, 128) bf16, zero-padded
            b = v_ref[pl.ds(i, 1), :]                     # (1, 128) f32 bias row
            acc = jnp.dot(h.astype(jnp.bfloat16), w,      # bf16 MXU, f32 accumulate
                          preferred_element_type=jnp.float32)
            h = jnp.maximum(acc + b, 0.0)                 # bias/ReLU in f32 (VPU)
            # Dropout(0.1) -> identity at inference time (no-op)
        # Value head (h_last -> 1): f32 multiply + lane reduction on VPU/XLU,
        # avoiding a 1-lane-wide MXU result and a masked partial store.
        w_head = v_ref[pl.ds(n_hidden, 1), :]             # (1, 128) f32
        b_head = v_ref[pl.ds(n_hidden + 1, 1), :]         # (1, 128) f32, replicated scalar
        v = jnp.sum(h * w_head, axis=-1, keepdims=True)   # (TB, 1)
        out_ref[...] = (v + b_head).astype(out_ref.dtype) # lane-dense (TB, 128) store

    return kernel


# ----------------------------------------------------------------------------
# One-time parameter packing (call at init, NOT per forward call).
# ----------------------------------------------------------------------------
def pack_params(params, width=WIDTH):
    """params: list of (W (in,out), b (out,)); last entry is the value head.

    Returns:
      w_slab (n_hidden, 128, 128) bf16 -- hidden weights, zero-padded.
      v_slab (rows, 128) f32           -- hidden biases + head-weight row + head-bias row.

    NOTE: correctness of the padding scheme relies on padded weight rows/cols
    and padded bias lanes being exactly 0 AND the activation being ReLU
    (0 -> 0), so padded lanes stay exactly 0 through the whole chain. Do not
    change the activation or pad with non-zeros without revisiting this.
    """
    *hidden, (w_head, b_head) = params
    n_hidden = len(hidden)

    w_blocks, b_rows = [], []
    for w, b in hidden:
        fi, fo = w.shape
        assert fi <= width and fo <= width, (fi, fo, width)
        wp = jnp.zeros((width, width), jnp.float32).at[:fi, :fo].set(w)
        bp = jnp.zeros((width,), jnp.float32).at[:fo].set(b.reshape(-1))
        w_blocks.append(wp)
        b_rows.append(bp)
    w_slab = jnp.stack(w_blocks).astype(jnp.bfloat16)     # (n_hidden, 128, 128)

    fi = w_head.shape[0]
    w_head_row = jnp.zeros((width,), jnp.float32).at[:fi].set(w_head[:, 0])
    b_head_row = jnp.full((width,), jnp.asarray(b_head, jnp.float32).reshape(()),
                          jnp.float32)

    rows = b_rows + [w_head_row, b_head_row]
    n_rows_pad = -(-len(rows) // 8) * 8                   # sublane-align to 8
    rows += [jnp.zeros((width,), jnp.float32)] * (n_rows_pad - len(rows))
    v_slab = jnp.stack(rows)                              # (n_rows_pad, 128) f32
    return jax.device_put(w_slab), jax.device_put(v_slab), n_hidden


# ----------------------------------------------------------------------------
# Batch-tile policy.
# ----------------------------------------------------------------------------
def _pick_batch_tile(B):
    if B <= 128:
        return -(-B // 8) * 8        # single grid step (2nd v7x TC idle at tiny B)
    if B < 512:
        return 128                   # >= 2 parallel steps -> both v7x TCs engaged
    return 256                       # fill v6e/v7x 256-wide MXU M dim, still >= 2 steps


# ----------------------------------------------------------------------------
# Jitted forward: pad -> fused kernel over a parallel batch grid -> slice col 0.
# ----------------------------------------------------------------------------
def make_forward(n_hidden):
    kernel = make_critic_kernel(n_hidden)

    @jax.jit
    def forward(global_state, w_slab, v_slab):
        B, gsd = global_state.shape
        TB = _pick_batch_tile(B)
        B_pad = -(-B // TB) * TB
        n_rows = v_slab.shape[0]

        x = jnp.pad(global_state.astype(jnp.float32),
                    ((0, B_pad - B), (0, WIDTH - gsd)))   # lane-dense (B_pad, 128)

        flops = 2 * B_pad * (n_hidden * WIDTH * WIDTH + WIDTH)
        bytes_accessed = (x.size * 4 + w_slab.size * 2 + v_slab.size * 4
                          + B_pad * WIDTH * 4)

        out = pl.pallas_call(
            kernel,
            out_shape=jax.ShapeDtypeStruct((B_pad, WIDTH), jnp.float32),
            grid=(B_pad // TB,),
            in_specs=[
                pl.BlockSpec((TB, WIDTH), lambda i: (i, 0)),                 # batch tile
                pl.BlockSpec((n_hidden, WIDTH, WIDTH), lambda i: (0, 0, 0)), # resident
                pl.BlockSpec((n_rows, WIDTH), lambda i: (0, 0)),             # resident
            ],
            out_specs=pl.BlockSpec((TB, WIDTH), lambda i: (i, 0)),
            compiler_params=pltpu.CompilerParams(
                dimension_semantics=("parallel",)),
            cost_estimate=pl.CostEstimate(
                flops=flops, transcendentals=0, bytes_accessed=bytes_accessed),
        )(x, w_slab, v_slab)

        # value.squeeze(-1) -> shape (B,)
        return out[:B, 0]

    return forward


# ----------------------------------------------------------------------------
# Deterministic synthetic parameters (no checkpoint) + pure-JAX references.
# ----------------------------------------------------------------------------
def init_params(key, dims):
    """dims = [in0, out0=in1, ..., out_last]. Weights are (in, out)."""
    params = []
    for i in range(len(dims) - 1):
        key, k_w, k_b = jax.random.split(key, 3)
        fan_in, fan_out = dims[i], dims[i + 1]
        w = jax.random.normal(k_w, (fan_in, fan_out), jnp.float32) * (1.0 / jnp.sqrt(fan_in))
        b = jax.random.normal(k_b, (fan_out,), jnp.float32) * 0.01
        params.append((w, b))
    return params


def reference_forward_f32(global_state, params):
    """Full-precision reference (matches the PyTorch module at eval time)."""
    h = global_state.astype(jnp.float32)
    n = len(params)
    for i, (w, b) in enumerate(params):
        h = jnp.dot(h, w, precision=jax.lax.Precision.HIGHEST) + b
        if i < n - 1:
            h = jnp.maximum(h, 0.0)
    return h[:, 0]


def reference_forward_bf16(global_state, params):
    """Reference that mirrors the kernel's numerics (bf16 MXU operands,
    f32 accumulation, f32 bias/ReLU, f32 value head)."""
    h = global_state.astype(jnp.float32)
    for w, b in params[:-1]:
        h = jnp.dot(h.astype(jnp.bfloat16), w.astype(jnp.bfloat16),
                    preferred_element_type=jnp.float32) + b
        h = jnp.maximum(h, 0.0)
    w_head, b_head = params[-1]
    return jnp.sum(h * w_head[:, 0], axis=-1) + jnp.asarray(b_head).reshape(())


if __name__ == "__main__":
    # Small config consistent with the module's __init__:
    config = {
        "model": {"d_model": 32, "critic_hidden_dims": [64, 32]},
        "environment": {"num_agvs": 2, "num_tasks": 3},
    }
    d_model = config["model"]["d_model"]
    num_agvs = config["environment"]["num_agvs"]
    num_tasks = config["environment"]["num_tasks"]
    global_state_dim = num_agvs * 5 + num_tasks * 6      # = 28
    hidden_dims = config["model"]["critic_hidden_dims"]

    # Layer dims: encoder gsd->2d->d ; critic d->64->32 ; value head 32->1
    dims = [global_state_dim, 2 * d_model, d_model] + hidden_dims + [1]

    key = jax.random.PRNGKey(0)
    key, k_x = jax.random.split(key)
    params = init_params(key, dims)

    # --- init-time work (done exactly once) ---
    w_slab, v_slab, n_hidden = pack_params(params)
    forward = make_forward(n_hidden)

    batch = 8
    global_state = jax.random.normal(k_x, (batch, global_state_dim), jnp.float32)

    value = jax.block_until_ready(forward(global_state, w_slab, v_slab))

    ref_bf16 = reference_forward_bf16(global_state, params)  # kernel-matched numerics
    ref_f32 = reference_forward_f32(global_state, params)    # full-precision module

    assert value.shape == (batch,)
    # Tight check against the numerics-matched reference.
    assert jnp.allclose(value, ref_bf16, atol=2e-3, rtol=2e-3), (value, ref_bf16)
    # Looser check against the f32 module reference (tolerance justified by the
    # bf16 weight slab; see perf review).
    assert jnp.allclose(value, ref_f32, atol=5e-2, rtol=5e-2), (value, ref_f32)

    print("KERNEL_OK")
</pallas_src>

<mosaic_0001>
module attributes {stable_mosaic.version = 11 : i64} {
  func.func @kernel(%arg0: i32, %arg1: memref<8x128xf32, #tpu.memory_space<vmem>>, %arg2: memref<4x128x128xbf16, #tpu.memory_space<vmem>>, %arg3: memref<8x128xf32, #tpu.memory_space<vmem>>, %arg4: memref<8x128xf32, #tpu.memory_space<vmem>>) attributes {dimension_semantics = [#tpu.dimension_semantics<parallel>], iteration_bounds = array<i64: 1>, scalar_prefetch = 0 : i64, scratch_operands = 0 : i64, tpu.core_type = #tpu.core_type<tc>, window_params = [{transform_indices = @transform_0, window_bounds = array<i64: 8, 128>}, {pipeline_mode = #tpu.pipeline_mode<synchronous>, transform_indices = @transform_1, window_bounds = array<i64: 4, 128, 128>}, {pipeline_mode = #tpu.pipeline_mode<synchronous>, transform_indices = @transform_2, window_bounds = array<i64: 8, 128>}, {transform_indices = @transform_3, window_bounds = array<i64: 8, 128>}]} {
    %c0 = arith.constant 0 : index
    %c0_0 = arith.constant 0 : index
    %0 = vector.load %arg1[%c0, %c0_0] : memref<8x128xf32, #tpu.memory_space<vmem>>, vector<8x128xf32>
    %c0_1 = arith.constant 0 : index
    %c0_2 = arith.constant 0 : index
    %c0_3 = arith.constant 0 : index
    %1 = vector.load %arg2[%c0_1, %c0_2, %c0_3] : memref<4x128x128xbf16, #tpu.memory_space<vmem>>, vector<1x128x128xbf16>
    %2 = vector.shape_cast %1 : vector<1x128x128xbf16> to vector<128x128xbf16>
    %c0_4 = arith.constant 0 : index
    %c0_5 = arith.constant 0 : index
    %3 = vector.load %arg3[%c0_4, %c0_5] : memref<8x128xf32, #tpu.memory_space<vmem>>, vector<1x128xf32>
    %4 = arith.truncf %0 : vector<8x128xf32> to vector<8x128xbf16>
    %cst = arith.constant dense<0.000000e+00> : vector<8x128xf32>
    %5 = tpu.matmul %4, %2, %cst {dimension_numbers = #tpu.dot_dimension_numbers<[1], [0], [0], [1], [0, 0, 1, 1], [], []>} : vector<8x128xbf16>, vector<128x128xbf16>, vector<8x128xf32> -> vector<8x128xf32>
    %6 = vector.broadcast %3 : vector<1x128xf32> to vector<8x128xf32>
    %7 = arith.addf %5, %6 : vector<8x128xf32>
    %cst_6 = arith.constant 0.000000e+00 : f32
    %8 = vector.broadcast %cst_6 : f32 to vector<8x128xf32>
    %9 = arith.maximumf %7, %8 : vector<8x128xf32>
    %c1 = arith.constant 1 : index
    %c0_7 = arith.constant 0 : index
    %c0_8 = arith.constant 0 : index
    %10 = vector.load %arg2[%c1, %c0_7, %c0_8] : memref<4x128x128xbf16, #tpu.memory_space<vmem>>, vector<1x128x128xbf16>
    %11 = vector.shape_cast %10 : vector<1x128x128xbf16> to vector<128x128xbf16>
    %c1_9 = arith.constant 1 : index
    %c0_10 = arith.constant 0 : index
    %12 = vector.load %arg3[%c1_9, %c0_10] : memref<8x128xf32, #tpu.memory_space<vmem>>, vector<1x128xf32>
    %13 = arith.truncf %9 : vector<8x128xf32> to vector<8x128xbf16>
    %cst_11 = arith.constant dense<0.000000e+00> : vector<8x128xf32>
    %14 = tpu.matmul %13, %11, %cst_11 {dimension_numbers = #tpu.dot_dimension_numbers<[1], [0], [0], [1], [0, 0, 1, 1], [], []>} : vector<8x128xbf16>, vector<128x128xbf16>, vector<8x128xf32> -> vector<8x128xf32>
    %15 = vector.broadcast %12 : vector<1x128xf32> to vector<8x128xf32>
    %16 = arith.addf %14, %15 : vector<8x128xf32>
    %cst_12 = arith.constant 0.000000e+00 : f32
    %17 = vector.broadcast %cst_12 : f32 to vector<8x128xf32>
    %18 = arith.maximumf %16, %17 : vector<8x128xf32>
    %c2 = arith.constant 2 : index
    %c0_13 = arith.constant 0 : index
    %c0_14 = arith.constant 0 : index
    %19 = vector.load %arg2[%c2, %c0_13, %c0_14] : memref<4x128x128xbf16, #tpu.memory_space<vmem>>, vector<1x128x128xbf16>
    %20 = vector.shape_cast %19 : vector<1x128x128xbf16> to vector<128x128xbf16>
    %c2_15 = arith.constant 2 : index
    %c0_16 = arith.constant 0 : index
    %21 = vector.load %arg3[%c2_15, %c0_16] : memref<8x128xf32, #tpu.memory_space<vmem>>, vector<1x128xf32>
    %22 = arith.truncf %18 : vector<8x128xf32> to vector<8x128xbf16>
    %cst_17 = arith.constant dense<0.000000e+00> : vector<8x128xf32>
    %23 = tpu.matmul %22, %20, %cst_17 {dimension_numbers = #tpu.dot_dimension_numbers<[1], [0], [0], [1], [0, 0, 1, 1], [], []>} : vector<8x128xbf16>, vector<128x128xbf16>, vector<8x128xf32> -> vector<8x128xf32>
    %24 = vector.broadcast %21 : vector<1x128xf32> to vector<8x128xf32>
    %25 = arith.addf %23, %24 : vector<8x128xf32>
    %cst_18 = arith.constant 0.000000e+00 : f32
    %26 = vector.broadcast %cst_18 : f32 to vector<8x128xf32>
    %27 = arith.maximumf %25, %26 : vector<8x128xf32>
    %c3 = arith.constant 3 : index
    %c0_19 = arith.constant 0 : index
    %c0_20 = arith.constant 0 : index
    %28 = vector.load %arg2[%c3, %c0_19, %c0_20] : memref<4x128x128xbf16, #tpu.memory_space<vmem>>, vector<1x128x128xbf16>
    %29 = vector.shape_cast %28 : vector<1x128x128xbf16> to vector<128x128xbf16>
    %c3_21 = arith.constant 3 : index
    %c0_22 = arith.constant 0 : index
    %30 = vector.load %arg3[%c3_21, %c0_22] : memref<8x128xf32, #tpu.memory_space<vmem>>, vector<1x128xf32>
    %31 = arith.truncf %27 : vector<8x128xf32> to vector<8x128xbf16>
    %cst_23 = arith.constant dense<0.000000e+00> : vector<8x128xf32>
    %32 = tpu.matmul %31, %29, %cst_23 {dimension_numbers = #tpu.dot_dimension_numbers<[1], [0], [0], [1], [0, 0, 1, 1], [], []>} : vector<8x128xbf16>, vector<128x128xbf16>, vector<8x128xf32> -> vector<8x128xf32>
    %33 = vector.broadcast %30 : vector<1x128xf32> to vector<8x128xf32>
    %34 = arith.addf %32, %33 : vector<8x128xf32>
    %cst_24 = arith.constant 0.000000e+00 : f32
    %35 = vector.broadcast %cst_24 : f32 to vector<8x128xf32>
    %36 = arith.maximumf %34, %35 : vector<8x128xf32>
    %c4 = arith.constant 4 : index
    %c0_25 = arith.constant 0 : index
    %37 = vector.load %arg3[%c4, %c0_25] : memref<8x128xf32, #tpu.memory_space<vmem>>, vector<1x128xf32>
    %c5 = arith.constant 5 : index
    %c0_26 = arith.constant 0 : index
    %38 = vector.load %arg3[%c5, %c0_26] : memref<8x128xf32, #tpu.memory_space<vmem>>, vector<1x128xf32>
    %39 = vector.broadcast %37 : vector<1x128xf32> to vector<8x128xf32>
    %40 = arith.mulf %36, %39 : vector<8x128xf32>
    %cst_27 = arith.constant dense<0.000000e+00> : vector<8xf32>
    %41 = vector.multi_reduction <add>, %40, %cst_27 [1] : vector<8x128xf32> to vector<8xf32>
    %42 = vector.shape_cast %41 : vector<8xf32> to vector<8x1xf32>
    %43 = vector.broadcast %42 : vector<8x1xf32> to vector<8x128xf32>
    %44 = vector.broadcast %38 : vector<1x128xf32> to vector<8x128xf32>
    %45 = arith.addf %43, %44 : vector<8x128xf32>
    %c0_28 = arith.constant 0 : index
    %c0_29 = arith.constant 0 : index
    %46 = vector.load %arg4[%c0_28, %c0_29] : memref<8x128xf32, #tpu.memory_space<vmem>>, vector<8x128xf32>
    tpu.vector_store %arg4[%c0_28, %c0_29], %45 {strides = array<i32>} : memref<8x128xf32, #tpu.memory_space<vmem>>, vector<8x128xf32>,
    return
  }
  func.func @transform_0(%arg0: i32) -> (i32, i32) {
    %c0_i32 = arith.constant 0 : i32
    %c0_i32_0 = arith.constant 0 : i32
    return %arg0, %c0_i32 : i32, i32
  }
  func.func @transform_1(%arg0: i32) -> (i32, i32, i32) {
    %c0_i32 = arith.constant 0 : i32
    %c0_i32_0 = arith.constant 0 : i32
    %c0_i32_1 = arith.constant 0 : i32
    %c0_i32_2 = arith.constant 0 : i32
    return %c0_i32, %c0_i32_0, %c0_i32_1 : i32, i32, i32
  }
  func.func @transform_2(%arg0: i32) -> (i32, i32) {
    %c0_i32 = arith.constant 0 : i32
    %c0_i32_0 = arith.constant 0 : i32
    %c0_i32_1 = arith.constant 0 : i32
    return %c0_i32, %c0_i32_0 : i32, i32
  }
  func.func @transform_3(%arg0: i32) -> (i32, i32) {
    %c0_i32 = arith.constant 0 : i32
    %c0_i32_0 = arith.constant 0 : i32
    return %arg0, %c0_i32 : i32, i32
  }
}

</mosaic_0001>

<bundles_post_ra>
// kernel: forward.1
= control target key start
LH: loop header
LB: loop body
LE: loop exit
PB: predicated region body
PF: predicated region fallthrough
CT: control target
= control target key end

     0   :  { %8 = vsyncpa [#allocation3], 0  ;;  %s567_s15 = smov [#allocation2]   ;;  %s568_s17 = smov 64   ;;  %s617_s0 = inlined_call_operand.vmem [shape: f32[8,128], index: 0, kind: input, shape index: {}]   ;;  %s618_s1 = inlined_call_operand.hbm [shape: bf16[4,128,128], index: 1, kind: input, shape index: {}]   ;;  %s619_s2 = inlined_call_operand.vmem [shape: f32[8,128], index: 2, kind: input, shape index: {}]   ;;  %s620_s3 = inlined_call_operand.vmem [shape: f32[8,128], index: 3, kind: output, shape index: {}]  }
   0x1   :  { %s15_s14 = sshll.u32 %s618_s1, 4  ;;  %s17_s16 = sshll.u32 %s567_s15, 4  ;;  %s16_s14 = int_to_ptr.hbm [resolvable:$true] %s15_s14  ;;  %s18_s16 = int_to_ptr.vmem [resolvable:$true] %s17_s16 }
   0x2   :  { %s569_s18 = smov 4  }
   0x3   :  { %23 = dma.hbm_to_vmem [thread:$0]  %s16_s14, 4096, %s18_s16, [#allocation3], %s568_s17, %s568_s17, %s569_s18  }
   0x4   :  { %565 = dma.done.wait [#allocation3], 4096  }
   0x5   :  { %566 = vsyncadd [#allocation3], 4294963200  ;;  %v507_v0 = vld [vmem:[#allocation2 + $0x38] sm:$0xff]  ;;  %v506_v1 = vld [vmem:[#allocation2 + $0x30] sm:$0xff] }
   0x6   :  { %98 = vmatpush.bf16.msra.mxu0 %v507_v0  ;;  %v515_v2 = vld [vmem:[#allocation2 + $0x78] sm:$0xff]  ;;  %v505_v3 = vld [vmem:[#allocation2 + $0x28] sm:$0xff]  ;;  %v514_v4 = vld [vmem:[#allocation2 + $0x70] sm:$0xff] }
   0x7   :  { %180 = vmatpush.bf16.msra.mxu1 %v515_v2  ;;  %v513_v5 = vld [vmem:[#allocation2 + $0x68] sm:$0xff]  ;;  %v504_v6 = vld [vmem:[#allocation2 + $0x20] sm:$0xff]  ;;  %v503_v8 = vld [vmem:[#allocation2 + $0x18] sm:$0xff] }
   0x8   :  { %v512_v7 = vld [vmem:[#allocation2 + $0x60] sm:$0xff]  ;;  %v511_v9 = vld [vmem:[#allocation2 + $0x58] sm:$0xff]  ;;  %v502_v10 = vld [vmem:[#allocation2 + $0x10] sm:$0xff] }
   0x9   :  { %v510_v11 = vld [vmem:[#allocation2 + $0x50] sm:$0xff]  ;;  %v501_v12 = vld [vmem:[#allocation2 + $0x8] sm:$0xff]  ;;  %v500_v13 = vld [vmem:[#allocation2] sm:$0xff] }
   0xa   :  { %99 = vmatpush.bf16.msra.mxu0 %v506_v1  ;;  %v30_v14 = vld [vmem:[%s617_s0] sm:$0xff]  ;;  %v509_v16 = vld [vmem:[#allocation2 + $0x48] sm:$0xff]  ;;  %v523_v18 = vld [vmem:[#allocation2 + $0xb8] sm:$0xff] }
   0xb   :  { %181 = vmatpush.bf16.msra.mxu1 %v514_v4  ;;  %v48_v15 = vpack.c.bf16 %v30_v14, %v30_v14  ;;  %v508_v17 = vld [vmem:[#allocation2 + $0x40] sm:$0xff]  ;;  %262 = vmatpush.bf16.msra.mxu2 %v523_v18  ;;  %v522_v19 = vld [vmem:[#allocation2 + $0xb0] sm:$0xff]  ;;  %v521_v20 = vld [vmem:[#allocation2 + $0xa8] sm:$0xff] }
   0xc   :  { %v520_v21 = vld [vmem:[#allocation2 + $0xa0] sm:$0xff]  ;;  %v519_v22 = vld [vmem:[#allocation2 + $0x98] sm:$0xff]  ;;  %v518_v23 = vld [vmem:[#allocation2 + $0x90] sm:$0xff] }
   0xd   :  { %v535_v24 = vld [vmem:[%s619_s2] ss:$0 sm:$0xff]  ;;  %v517_v30 = vld [vmem:[#allocation2 + $0x88] sm:$0xff]  ;;  %v531_v32 = vld [vmem:[#allocation2 + $0xf8] sm:$0xff] }
   0xe   :  { %100 = vmatpush.bf16.msra.mxu0 %v505_v3  ;;  %v516_v31 = vld [vmem:[#allocation2 + $0x80] sm:$0xff]  ;;  %344 = vmatpush.bf16.msra.mxu3 %v531_v32  ;;  %v530_v33 = vld [vmem:[#allocation2 + $0xf0] sm:$0xff]  ;;  %v529_v34 = vld [vmem:[#allocation2 + $0xe8] sm:$0xff] }
   0xf   :  { %182 = vmatpush.bf16.msra.mxu1 %v513_v5  ;;  %263 = vmatpush.bf16.msra.mxu2 %v522_v19  ;;  %v528_v35 = vld [vmem:[#allocation2 + $0xe0] sm:$0xff]  ;;  %v527_v36 = vld [vmem:[#allocation2 + $0xd8] sm:$0xff]  ;;  %v526_v37 = vld [vmem:[#allocation2 + $0xd0] sm:$0xff] }
  0x10   :  { %v536_v38 = vld [vmem:[%s619_s2 + $0x1] ss:$0 sm:$0xff]  ;;  %v525_v44 = vld [vmem:[#allocation2 + $0xc8] sm:$0xff]  ;;  %v537_v46 = vld [vmem:[%s619_s2 + $0x2] ss:$0 sm:$0xff] }
  0x11   :  { %v524_v45 = vld [vmem:[#allocation2 + $0xc0] sm:$0xff] }
  0x12   :  { %101 = vmatpush.bf16.msra.mxu0 %v504_v6  ;;  %345 = vmatpush.bf16.msra.mxu3 %v530_v33  ;;  %v538_v52 = vld [vmem:[%s619_s2 + $0x3] ss:$0 sm:$0xff]  ;;  %v539_v55 = vld [vmem:[%s619_s2 + $0x4] ss:$0 sm:$0xff]  ;;  %v540_v59 = vld [vmem:[%s619_s2 + $0x5] ss:$0 sm:$0xff] }
  0x13   :  { %183 = vmatpush.bf16.msra.mxu1 %v512_v7  ;;  %264 = vmatpush.bf16.msra.mxu2 %v521_v20 }
  0x16   :  { %102 = vmatpush.bf16.msra.mxu0 %v503_v8  ;;  %346 = vmatpush.bf16.msra.mxu3 %v529_v34 }
  0x17   :  { %184 = vmatpush.bf16.msra.mxu1 %v511_v9  ;;  %265 = vmatpush.bf16.msra.mxu2 %v520_v21 }
  0x1a   :  { %103 = vmatpush.bf16.msra.mxu0 %v502_v10  ;;  %347 = vmatpush.bf16.msra.mxu3 %v528_v35 }
  0x1b   :  { %185 = vmatpush.bf16.msra.mxu1 %v510_v11  ;;  %266 = vmatpush.bf16.msra.mxu2 %v519_v22 }
  0x1e   :  { %104 = vmatpush.bf16.msra.mxu0 %v501_v12  ;;  %348 = vmatpush.bf16.msra.mxu3 %v527_v36 }
  0x1f   :  { %186 = vmatpush.bf16.msra.mxu1 %v509_v16  ;;  %267 = vmatpush.bf16.msra.mxu2 %v518_v23 }
  0x22   :  { %105 = vmatpush.bf16.msra.mxu0 %v500_v13  ;;  %349 = vmatpush.bf16.msra.mxu3 %v526_v37 }
  0x23   :  { %187 = vmatpush.bf16.msra.mxu1 %v508_v17  ;;  %268 = vmatpush.bf16.msra.mxu2 %v517_v30 }
  0x25   :  { %106 = vmatmul.bf16.vlgmr.msra.gmra.mxu0 %v48_v15 }
  0x26   :  { %350 = vmatpush.bf16.msra.mxu3 %v525_v44 }
  0x27   :  { %269 = vmatpush.bf16.msra.mxu2 %v516_v31 }
  0x2a   :  { %351 = vmatpush.bf16.msra.mxu3 %v524_v45 }
  0xa2   :  { %v107_v25 = vpop.f32.mrf.mxu0 }
  0xa3   :  { %v108_v26 = vadd.f32 %v535_v24, %v107_v25 }
  0xa5   :  { %v111_v27 = vmax.f32 %v108_v26, 0.0 }
  0xa7   :  { %v130_v28 = vpack.c.bf16 %v111_v27, %v111_v27 }
  0xa9   :  { %188 = vmatmul.bf16.vlgmr.msra.gmra.mxu1 %v130_v28 }
  0xaa   :  { %v109_v29 = vpop.f32.mrf.mxu0 }
 0x126   :  { %v189_v39 = vpop.f32.mrf.mxu1 }
 0x127   :  { %v190_v40 = vadd.f32 %v536_v38, %v189_v39 }
 0x129   :  { %v193_v41 = vmax.f32 %v190_v40, 0.0 }
 0x12b   :  { %v212_v42 = vpack.c.bf16 %v193_v41, %v193_v41 }
 0x12d   :  { %270 = vmatmul.bf16.vlgmr.msra.gmra.mxu2 %v212_v42 }
 0x12e   :  { %v191_v43 = vpop.f32.mrf.mxu1 }
 0x1b0   :  { %v271_v47 = vpop.f32.mrf.mxu2 }
 0x1b1   :  { %v272_v48 = vadd.f32 %v537_v46, %v271_v47 }
 0x1b3   :  { %v275_v49 = vmax.f32 %v272_v48, 0.0 }
 0x1b5   :  { %v294_v50 = vpack.c.bf16 %v275_v49, %v275_v49 }
 0x1b7   :  { %352 = vmatmul.bf16.vlgmr.msra.gmra.mxu3 %v294_v50 }
 0x1b8   :  { %v273_v51 = vpop.f32.mrf.mxu2 }
 0x23a   :  { %v353_v53 = vpop.f32.mrf.mxu3 }
 0x23b   :  { %v354_v54 = vadd.f32 %v538_v52, %v353_v53 }
 0x23d   :  { %v357_v56 = vmax.f32 %v354_v54, 0.0 }
 0x23f   :  { %v361_v57 = vmul.f32 %v539_v55, %v357_v56 }
 0x241   :  { %362 = vadd.xlane.f32.xlu0 %v361_v57 }
 0x242   :  { %v355_v58 = vpop.f32.mrf.mxu3 }
 0x2b4   :  { %v363_v60 = vpop.xlane.xlu0 %362 }
 0x2b5   :  { %v365_v61 = vadd.f32 %v540_v59, %v363_v60 }
 0x2b7   :  { %366 = vst [vmem:[%s620_s3] sm:$0xff] %v365_v61 }
 0x2b8   :  { %371 = vsyncpa [#allocation3], 1 }

</bundles_post_ra>
